<compile_context>
chip_gen: v7x
topology: tpu7x:2x2x1
jax: 0.10.0
libtpu: 0.0.40
codegen_flags: <defaults>
</compile_context>

<pallas_src>
import functools

import jax
import jax.numpy as jnp
from jax import lax
from jax.experimental import pallas as pl
from jax.experimental.pallas import tpu as pltpu


def _recon_loss_kernel(logits_ref, targets_ref, out_ref, *,
                       pad_id, total_rows, inner_steps):
    """Process one (tile_rows, V) tile of the flattened (B*S, V) logits.

    out_ref is a (tile_rows, 1) f32 per-row partial-sum block that stays
    resident in VMEM across the inner ("arbitrary") grid axis and is indexed
    by the outer ("parallel") core axis, so each TensorCore accumulates into
    its own block.
    """
    c = pl.program_id(0)            # row-split / core index (parallel)
    i = pl.program_id(1)            # tile index within the split (arbitrary)
    tile_rows = logits_ref.shape[0]
    vocab = logits_ref.shape[1]

    @pl.when(i == 0)
    def _init():
        out_ref[...] = jnp.zeros_like(out_ref)

    # Global (unclamped) tile index.  The BlockSpec index maps clamp to the
    # last real tile, and rows beyond total_rows are masked below, so a
    # fully out-of-range tile contributes exactly zero (no double counting).
    t = c * inner_steps + i
    row0 = t * tile_rows

    z = logits_ref[...]                                         # (T, V) native dtype
    tgt = targets_ref[...]                                      # (T, 1) int32

    # Validity mask: ragged rows of the final tile, fully-OOB duplicate tiles,
    # and pad targets.
    row_ids = row0 + lax.broadcasted_iota(jnp.int32, (tile_rows, 1), 0)
    valid = (row_ids < total_rows) & (tgt != pad_id)            # (T, 1) bool

    # Row max and target gather in the native dtype (bf16 VALU on v6e/v7x;
    # v5e just upcasts).  Only the exp / softmax-denominator path is f32.
    m = jnp.max(z, axis=-1, keepdims=True)                      # (T, 1) native
    vocab_row = lax.broadcasted_iota(jnp.int32, (1, vocab), 1)  # (1, V) lane iota
    tok = jnp.sum(jnp.where(vocab_row == tgt, z, jnp.zeros((), z.dtype)),
                  axis=-1, keepdims=True)                       # (T, 1), exact (one hot)

    e = jnp.exp((z - m).astype(jnp.float32))                    # (T, V) f32: only wide f32 temp
    s = jnp.sum(e, axis=-1, keepdims=True)                      # (T, 1) f32

    per_row = m.astype(jnp.float32) + jnp.log(s) - tok.astype(jnp.float32)

    # NOTE: garbage rows of a partial / duplicated tile can make per_row
    # inf/NaN, but jnp.where is a pure select so it does not propagate.
    # Do NOT replace this select with a multiply-by-mask.
    out_ref[...] += jnp.where(valid, per_row, 0.0)


def reconstruction_loss(y_pred, y_true, pad_id=0, tile_rows=None):
    """y_pred: (B, S, V) float logits (any float dtype); y_true: (B, S) int ids."""
    B, S, V = y_pred.shape
    total_rows = B * S
    itemsize = jnp.dtype(y_pred.dtype).itemsize

    # Next-token shift done OUTSIDE the kernel on the small target array:
    # row (b, t) is scored against y_true[b, t+1]; the last position of each
    # sequence gets pad_id so it contributes nothing (reference scores S-1
    # positions only).  Keeps every logits tile (8,128)-aligned.
    shifted = jnp.concatenate(
        [y_true[:, 1:].astype(jnp.int32),
         jnp.full((B, 1), pad_id, dtype=jnp.int32)],
        axis=1,
    )
    targets = shifted.reshape(total_rows, 1)
    logits = y_pred.reshape(total_rows, V)     # contiguous view; no HBM dtype copy

    # Generation-aware VMEM budget: ~3/4 of physical VMEM (~96 MiB v5e/v6e,
    # ~48 MiB on v7x which has 64 MiB per TensorCore).
    try:
        vmem_cap = int(pltpu.get_tpu_info().vmem_capacity_bytes)
    except Exception:
        vmem_cap = 64 << 20
    tile_budget = max(16 << 20, (vmem_cap * 3) // 4)

    # Per-row VMEM: double-buffered native-dtype logits tile + one f32 exp
    # intermediate + lane-padded (T,1) target/output blocks (~2 KiB/row).
    bytes_per_row = V * (2 * itemsize + 4) + 2048
    # Sublane packing: 8 rows/vreg group for f32, 16 for bf16, 32 for 8-bit.
    align = 8 * max(1, 4 // max(itemsize, 1))

    if tile_rows is None:
        tile_rows = tile_budget // max(bytes_per_row, 1)
        tile_rows = max(align, min(4096, tile_rows))
        tile_rows -= tile_rows % align
    tile_rows = int(min(tile_rows, total_rows))
    if tile_rows < total_rows:
        tile_rows = max(8, tile_rows - tile_rows % 8)   # keep sublane-aligned

    n_tiles = (total_rows + tile_rows - 1) // tile_rows
    inner_steps = (n_tiles + 1) // 2            # rows split across 2 TCs (v7x megacore)
    last_tile = n_tiles - 1

    def in_map(c, i):
        # Clamp so no block index is ever fully out of bounds; the kernel's
        # row-id mask zeroes the duplicated tile's contribution.
        return (jnp.minimum(c * inner_steps + i, last_tile), 0)

    vmem_need = tile_rows * bytes_per_row + (4 << 20)
    vmem_limit = int(min(max(vmem_need, 16 << 20), (vmem_cap * 7) // 8))

    cost = pl.CostEstimate(
        flops=int(5 * total_rows * V),
        transcendentals=int(total_rows * V + total_rows),
        bytes_accessed=int(total_rows * V * itemsize + total_rows * 4
                           + 2 * tile_rows * 4),
    )

    # TODO(synk): pad_id is baked in statically (recompiles if it varies); pass it
    # via an SMEM scalar if that matters.  For extremely large V, add a vocab grid
    # axis with an online (flash-style) max/sum carry; a full-V row tile is fine
    # for any realistic vocab size.
    kernel = functools.partial(_recon_loss_kernel, pad_id=int(pad_id),
                               total_rows=total_rows, inner_steps=inner_steps)

    partials = pl.pallas_call(
        kernel,
        grid=(2, inner_steps),
        out_shape=jax.ShapeDtypeStruct((2, tile_rows, 1), jnp.float32),
        in_specs=[
            pl.BlockSpec((tile_rows, V), in_map),
            pl.BlockSpec((tile_rows, 1), in_map),
        ],
        # Per-core per-row partial sums; resident across the inner axis.
        out_specs=pl.BlockSpec((None, tile_rows, 1), lambda c, i: (c, 0, 0)),
        compiler_params=pltpu.CompilerParams(
            dimension_semantics=("parallel", "arbitrary"),
            vmem_limit_bytes=vmem_limit,
        ),
        cost_estimate=cost,
    )(logits, targets)

    # Final tiny reduction (2 * tile_rows values) done in XLA.
    return jnp.sum(partials) / B


def _reference_loss(y_pred, y_true, pad_id=0):
    """Pure-JAX mirror of the PyTorch forward (softmax -> masked prod -> -log)."""
    probs = jax.nn.softmax(y_pred[:, :-1, :].astype(jnp.float32), axis=-1)
    targets = y_true[:, 1:]
    gathered = jnp.take_along_axis(probs, targets[:, :, None], axis=-1)[..., 0]
    mask = targets != pad_id
    p_correct = jnp.prod(jnp.where(mask, gathered, 1.0), axis=-1)
    return jnp.mean(-jnp.log(p_correct))


if __name__ == "__main__":
    # Small shapes implied by the forward: batch=2, seq_len=8, vocab/dim=32.
    B, S, V = 2, 8, 32
    key = jax.random.PRNGKey(0)
    k1, k2 = jax.random.split(key)
    y_pred = jax.random.normal(k1, (B, S, V), dtype=jnp.float32)
    y_true = jax.random.randint(k2, (B, S), minval=0, maxval=V, dtype=jnp.int32)
    # Force a couple of pad tokens so the pad-masking path is exercised.
    y_true = y_true.at[0, 3].set(0).at[1, 5].set(0)

    loss = reconstruction_loss(y_pred, y_true, pad_id=0)
    jax.block_until_ready(loss)
    ref = _reference_loss(y_pred, y_true, pad_id=0)
    assert jnp.allclose(loss, ref, atol=1e-4, rtol=1e-4), (float(loss), float(ref))

    # Exercise the native-bf16 streaming path (bf16 max/gather, f32 exp/sum).
    y_pred_bf16 = y_pred.astype(jnp.bfloat16)
    loss_bf16 = reconstruction_loss(y_pred_bf16, y_true, pad_id=0)
    jax.block_until_ready(loss_bf16)
    ref_bf16 = _reference_loss(y_pred_bf16, y_true, pad_id=0)
    assert jnp.allclose(loss_bf16, ref_bf16, atol=2e-2, rtol=2e-2), (
        float(loss_bf16), float(ref_bf16))

    print("KERNEL_OK")
</pallas_src>

<mosaic_0001>
module attributes {stable_mosaic.version = 11 : i64} {
  func.func @_recon_loss_kernel(%arg0: i32, %arg1: i32, %arg2: memref<16x32xf32, #tpu.memory_space<vmem>>, %arg3: memref<16x1xi32, #tpu.memory_space<vmem>>, %arg4: memref<1x16x1xf32, #tpu.memory_space<vmem>>) attributes {dimension_semantics = [#tpu.dimension_semantics<parallel>, #tpu.dimension_semantics<arbitrary>], iteration_bounds = array<i64: 2, 1>, scalar_prefetch = 0 : i64, scratch_operands = 0 : i64, tpu.core_type = #tpu.core_type<tc>, window_params = [{transform_indices = @transform_0, window_bounds = array<i64: 16, 32>}, {transform_indices = @transform_1, window_bounds = array<i64: 16, 1>}, {transform_indices = @transform_2, window_bounds = array<i64: 1, 16, 1>}]} {
    %c0_i32 = arith.constant 0 : i32
    %0 = arith.cmpi eq, %arg1, %c0_i32 : i32
    %1 = arith.extui %0 : i1 to i32
    %c0_i32_0 = arith.constant 0 : i32
    %2 = arith.cmpi ne, %1, %c0_i32_0 : i32
    scf.if %2 {
      %cst_16 = arith.constant 0.000000e+00 : f32
      %42 = vector.broadcast %cst_16 : f32 to vector<16x1xf32>
      %c0_17 = arith.constant 0 : index
      %c0_18 = arith.constant 0 : index
      %c0_19 = arith.constant 0 : index
      %43 = vector.load %arg4[%c0_17, %c0_18, %c0_19] : memref<1x16x1xf32, #tpu.memory_space<vmem>>, vector<1x16x1xf32>
      %44 = vector.shape_cast %43 : vector<1x16x1xf32> to vector<16x1xf32>
      %45 = vector.shape_cast %42 : vector<16x1xf32> to vector<1x16x1xf32>
      tpu.vector_store %arg4[%c0_17, %c0_18, %c0_19], %45 {strides = array<i32>} : memref<1x16x1xf32, #tpu.memory_space<vmem>>, vector<1x16x1xf32>,
    } else {
    }
    %c1_i32 = arith.constant 1 : i32
    %3 = arith.muli %arg0, %c1_i32 : i32
    %4 = arith.addi %3, %arg1 : i32
    %c16_i32 = arith.constant 16 : i32
    %5 = arith.muli %4, %c16_i32 : i32
    %c0 = arith.constant 0 : index
    %c0_1 = arith.constant 0 : index
    %6 = vector.load %arg2[%c0, %c0_1] : memref<16x32xf32, #tpu.memory_space<vmem>>, vector<16x32xf32>
    %c0_2 = arith.constant 0 : index
    %c0_3 = arith.constant 0 : index
    %7 = vector.load %arg3[%c0_2, %c0_3] : memref<16x1xi32, #tpu.memory_space<vmem>>, vector<16x1xi32>
    %8 = tpu.iota {dimensions = array<i32: 0>} : vector<16x1xi32>
    %9 = vector.broadcast %5 : i32 to vector<16x1xi32>
    %10 = arith.addi %9, %8 : vector<16x1xi32>
    %c16_i32_4 = arith.constant 16 : i32
    %11 = vector.broadcast %c16_i32_4 : i32 to vector<16x1xi32>
    %12 = arith.cmpi slt, %10, %11 : vector<16x1xi32>
    %c0_i32_5 = arith.constant 0 : i32
    %13 = vector.broadcast %c0_i32_5 : i32 to vector<16x1xi32>
    %14 = arith.cmpi ne, %7, %13 : vector<16x1xi32>
    %15 = arith.andi %12, %14 : vector<16x1xi1>
    %cst = arith.constant dense<0xFF800000> : vector<16xf32>
    %16 = vector.multi_reduction <maximumf>, %6, %cst [1] : vector<16x32xf32> to vector<16xf32>
    %17 = vector.shape_cast %16 : vector<16xf32> to vector<16x1xf32>
    %18 = tpu.iota {dimensions = array<i32: 1>} : vector<1x32xi32>
    %19 = vector.broadcast %18 : vector<1x32xi32> to vector<16x32xi32>
    %20 = vector.broadcast %7 : vector<16x1xi32> to vector<16x32xi32>
    %21 = arith.cmpi eq, %19, %20 : vector<16x32xi32>
    %cst_6 = arith.constant 0.000000e+00 : f32
    %22 = vector.broadcast %cst_6 : f32 to vector<16x32xf32>
    %23 = arith.select %21, %6, %22 : vector<16x32xi1>, vector<16x32xf32>
    %cst_7 = arith.constant dense<0.000000e+00> : vector<16xf32>
    %24 = vector.multi_reduction <add>, %23, %cst_7 [1] : vector<16x32xf32> to vector<16xf32>
    %25 = vector.shape_cast %24 : vector<16xf32> to vector<16x1xf32>
    %26 = vector.broadcast %17 : vector<16x1xf32> to vector<16x32xf32>
    %27 = arith.subf %6, %26 : vector<16x32xf32>
    %28 = math.exp %27 : vector<16x32xf32>
    %cst_8 = arith.constant dense<0.000000e+00> : vector<16xf32>
    %29 = vector.multi_reduction <add>, %28, %cst_8 [1] : vector<16x32xf32> to vector<16xf32>
    %30 = vector.shape_cast %29 : vector<16xf32> to vector<16x1xf32>
    %31 = math.log %30 : vector<16x1xf32>
    %32 = arith.addf %17, %31 : vector<16x1xf32>
    %33 = arith.subf %32, %25 : vector<16x1xf32>
    %c0_9 = arith.constant 0 : index
    %c0_10 = arith.constant 0 : index
    %c0_11 = arith.constant 0 : index
    %34 = vector.load %arg4[%c0_9, %c0_10, %c0_11] : memref<1x16x1xf32, #tpu.memory_space<vmem>>, vector<1x16x1xf32>
    %35 = vector.shape_cast %34 : vector<1x16x1xf32> to vector<16x1xf32>
    %cst_12 = arith.constant 0.000000e+00 : f32
    %36 = vector.broadcast %cst_12 : f32 to vector<16x1xf32>
    %37 = arith.select %15, %33, %36 : vector<16x1xi1>, vector<16x1xf32>
    %38 = arith.addf %35, %37 : vector<16x1xf32>
    %c0_13 = arith.constant 0 : index
    %c0_14 = arith.constant 0 : index
    %c0_15 = arith.constant 0 : index
    %39 = vector.load %arg4[%c0_13, %c0_14, %c0_15] : memref<1x16x1xf32, #tpu.memory_space<vmem>>, vector<1x16x1xf32>
    %40 = vector.shape_cast %39 : vector<1x16x1xf32> to vector<16x1xf32>
    %41 = vector.shape_cast %38 : vector<16x1xf32> to vector<1x16x1xf32>
    tpu.vector_store %arg4[%c0_13, %c0_14, %c0_15], %41 {strides = array<i32>} : memref<1x16x1xf32, #tpu.memory_space<vmem>>, vector<1x16x1xf32>,
    return
  }
  func.func @transform_0(%arg0: i32, %arg1: i32) -> (i32, i32) {
    %c1_i32 = arith.constant 1 : i32
    %0 = arith.muli %arg0, %c1_i32 : i32
    %1 = arith.addi %0, %arg1 : i32
    %c0_i32 = arith.constant 0 : i32
    %2 = arith.minsi %1, %c0_i32 : i32
    %c0_i32_0 = arith.constant 0 : i32
    %c0_i32_1 = arith.constant 0 : i32
    return %2, %c0_i32_0 : i32, i32
  }
  func.func @transform_1(%arg0: i32, %arg1: i32) -> (i32, i32) {
    %c1_i32 = arith.constant 1 : i32
    %0 = arith.muli %arg0, %c1_i32 : i32
    %1 = arith.addi %0, %arg1 : i32
    %c0_i32 = arith.constant 0 : i32
    %2 = arith.minsi %1, %c0_i32 : i32
    %c0_i32_0 = arith.constant 0 : i32
    %c0_i32_1 = arith.constant 0 : i32
    return %2, %c0_i32_0 : i32, i32
  }
  func.func @transform_2(%arg0: i32, %arg1: i32) -> (i32, i32, i32) {
    %c0_i32 = arith.constant 0 : i32
    %c0_i32_0 = arith.constant 0 : i32
    %c0_i32_1 = arith.constant 0 : i32
    return %arg0, %c0_i32, %c0_i32_0 : i32, i32, i32
  }
}

</mosaic_0001>

<bundles_post_ra>
// kernel: tpu_custom_call.1
= control target key start
LH: loop header
LB: loop body
LE: loop exit
PB: predicated region body
PF: predicated region fallthrough
CT: control target
= control target key end

     0   :  { %s468_s9 = smov 0   ;;  %s470_s10 = smov 0   ;;  %s541_s0 = inlined_call_operand.vmem [shape: f32[16,32], index: 0, kind: input, shape index: {}]   ;;  %s542_s1 = inlined_call_operand.vmem [shape: s32[16,1], index: 1, kind: input, shape index: {}]   ;;  %s543_s2 = inlined_call_operand.vmem [shape: f32[2,16,1], index: 2, kind: output, shape index: {}]  }
   0x1   :  { %s472_s11 = smov 0  }
   0x2 LB: > { %s24_s12 = sadd.s32 1, %s445_s10  ;;  %p380_p0 = scmp.ge.s32.totalorder %s449_s11, 1  ;;  %s449_s11 = sphi %s472_s11, %s12_s11   ;;  %s445_s10 = sphi %s470_s10, %s549_s10   ;;  %s441_s9 = sphi %s468_s9, %s548_s9  }
   0x3   : > { %p26_p1 = scmp.ge.s32.totalorder %s24_s12, 2  ;;  %p160_p2 = scmp.lt.s32.totalorder %s449_s11, 3 }
   0x5   : > { %s551_s12 = smov (%p26_p1, %s24_s12), 0  ;;  %p161_p3 = pnand %p380_p0, %p160_p2 }
   0x6   : > { %p194_p4 = scmp.lt.s32.totalorder (!%p161_p3), %s441_s9, 0  ;;  %s387_s13 = sshll.u32 (!%p161_p3), %s441_s9, 4  ;;  %v235_v0 = vlaneseq (!%p161_p3)  ;;  %v451_v1 = vmov (!%p161_p3), 0   ;;  %vm247_vm0 = vcmask (!%p161_p3), 261120   ;;  %vm226_vm6 = vcmask (!%p161_p3), 7168  }
   0x7   : > { %164 = sbr.rel (%p161_p3) target bundleno = 349 (0x15d), region = 28  ;;  %417 = vset.pattern.permute.xlu1 (!%p161_p3), %v451_v1  ;;  %418 = vset.pattern.permute.xlu0 (!%p161_p3), %v451_v1  ;;  %v238_v3 = vstv (!%p161_p3), %s387_s13  ;;  %p217_p6 = scmp.lt.s32.totalorder (!%p161_p3), %s441_s9, 1  ;;  %v452_v29 = vmov (!%p161_p3), 0.0  }
   0x8   : > { %v236_v2 = vshrl.u32 (!%p161_p3), %v235_v0, 7  ;;  %v255_v19 = vand.u32 (!%p161_p3), 127, %v235_v0 }
   0xa   : > { %v239_v4 = vadd.s32 (!%p161_p3), %v238_v3, %v236_v2  ;;  %v237_v30 = vadd.s32 (!%p161_p3), 8, %v236_v2 }
   0xc   : > { %vm241_vm1 = vcmp.lt.s32.totalorder (!%p161_p3), %v239_v4, 16  ;;  %v240_v31 = vadd.s32 (!%p161_p3), %v238_v3, %v237_v30 }
   0xe   : > { %s195_s14 = scalar_select %p194_p4, %s441_s9, 0  ;;  %vm242_vm8 = vcmp.lt.s32.totalorder %v240_v31, 16 }
   0xf   : > { %s555_s9 = smov (!%p217_p6, %s441_s9), 1 }
  0x10   : > { %s381_s15 = sshll.u32 %s195_s14, 1  ;;  %s390_s23 = sshll.u32 %s555_s9, 4 }
  0x11   : > { %p197_p5 = scmp.lt.s32.totalorder %s381_s15, 1  ;;  %s512_s26 = scalar_lea.vmem %s543_s2, %s390_s23 }
  0x12   : > { %227 = vst.msk [vmem:[%s512_s26] sm:$0xff] %vm226_vm6, %v452_v29  ;;  %228 = vst.msk [vmem:[%s512_s26 + $0x8] sm:$0xff] %vm226_vm6, %v452_v29 }
  0x13   : > { %s553_s15 = smov (!%p197_p5, %s381_s15), 1 }
  0x14   : > { %s382_s16 = sshll.u32 %s553_s15, 3 }
  0x15   : > { %s200_s19 = scalar_lea.vmem %s541_s0, %s382_s16  ;;  %s212_s22 = scalar_lea.vmem %s542_s1, %s382_s16 }
  0x16   : > { %v231_v5 = vld [vmem:[%s200_s19] sm:$0xff]  ;;  %v232_v6 = vld [vmem:[%s200_s19 + $0x8] sm:$0xff] }
  0x17   : > { %v233_v7 = vld [vmem:[%s212_s22] sm:$0xff]  ;;  %v248_v8 = vsel %vm247_vm0, %v231_v5, -inf  ;;  %v234_v10 = vld [vmem:[%s212_s22 + $0x8] sm:$0xff]  ;;  %v251_v11 = vsel %vm247_vm0, %v232_v6, -inf }
  0x18   : > { %257 = vperm.xlu1 %417, %v233_v7   ;;  %vm243_vm2 = vcmp.ne.s32.totalorder %v233_v7, 0  ;;  %249 = vmax.xlane.f32.xlu0 %v248_v8  ;;  %vm244_vm7 = vcmp.ne.s32.totalorder %v234_v10, 0 }
  0x19   : > { %vm498_vm3 = vmand %vm241_vm1, %vm243_vm2  ;;  %v292_v41 = vld [vmem:[%s512_s26] sm:$0xff]  ;;  %v293_v47 = vld [vmem:[%s512_s26 + $0x8] sm:$0xff] }
  0x1a   : > { %vm518_vm9 = vmand %vm242_vm8, %vm244_vm7 }
  0x1c   : > { %260 = vperm.xlu1 %417, %v234_v10   ;;  %252 = vmax.xlane.f32.xlu0 %v251_v11 }
  0x97   : > { %v258_v18 = vpop.permute.xlu1 %257 }
  0x98   : > { %vm262_vm4 = vcmp.eq.s32.totalorder %v255_v19, %v258_v18 }
  0x99   : > { %v264_v22 = vsel %vm262_vm4, %v231_v5, 0.0 }
  0x9a   : > { %v266_v24 = vsel %vm247_vm0, %v264_v22, 0.0 }
  0x9b   : > { %v261_v20 = vpop.permute.xlu1 %260 }
  0x9c   : > { %vm263_vm5 = vcmp.eq.s32.totalorder %v255_v19, %v261_v20 }
  0x9d   : > { %v265_v26 = vsel %vm263_vm5, %v232_v6, 0.0 }
  0x9e   : > { %v269_v28 = vsel %vm247_vm0, %v265_v26, 0.0 }
  0xa5   : > { %v250_v12 = vpop.xlane.xlu0 %249 }
  0xa6   : > { %v272_v13 = vsub.f32 %v231_v5, %v250_v12 }
  0xa8   : > { %v274_v14 = vmul.f32 1.442695, %v272_v13 }
  0xa9   : > { %v253_v15 = vpop.xlane.xlu0 %252 }
  0xaa   : > { %419 = vpow2.f32 %v274_v14  ;;  %v273_v16 = vsub.f32 %v232_v6, %v253_v15 }
  0xac   : > { %v276_v17 = vmul.f32 1.442695, %v273_v16 }
  0xae   : > { %421 = vpow2.f32 %v276_v17 }
  0xb4   : > { %v420_v21 = vpop.eup %419 }
  0xb5   : > { %v278_v23 = vsel %vm247_vm0, %v420_v21, 0.0 }
  0xb6   : > { %279 = vadd.xlane.f32.xlu0 %v278_v23 }
  0xb8   : > { %v422_v25 = vpop.eup %421 }
  0xb9   : > { %v281_v27 = vsel %vm247_vm0, %v422_v25, 0.0 }
  0xba   : > { %282 = vadd.xlane.f32.xlu1 %v281_v27  ;;  %267 = vadd.xlane.f32.xlu0 %v266_v24 }
  0xbe   : > { %270 = vadd.xlane.f32.xlu0 %v269_v28 }
 0x143   : > { %v280_v33 = vpop.xlane.xlu0 %279 }
 0x144   : > { %423 = vlog2.f32 %v280_v33 }
 0x147   : > { %v283_v34 = vpop.xlane.xlu1 %282  ;;  %v268_v37 = vpop.xlane.xlu0 %267 }
 0x148   : > { %425 = vlog2.f32 %v283_v34 }
 0x14b   : > { %v271_v46 = vpop.xlane.xlu0 %270 }
 0x14e   : > { %v424_v35 = vpop.eup %423 }
 0x14f   : > { %v285_v36 = vmul.f32 0.6931472, %v424_v35 }
 0x151   : > { %v288_v38 = vadd.f32 %v285_v36, %v250_v12 }
 0x152   : > { %v426_v39 = vpop.eup %425 }
 0x153   : > { %v287_v40 = vmul.f32 0.6931472, %v426_v39  ;;  %v290_v42 = vsub.f32 %v288_v38, %v268_v37 }
 0x155   : > { %v294_v43 = vsel %vm498_vm3, %v290_v42, 0.0  ;;  %v289_v44 = vadd.f32 %v287_v40, %v253_v15 }
 0x156   : > { %v296_v45 = vadd.f32 %v294_v43, %v292_v41 }
 0x157   : > { %v291_v48 = vsub.f32 %v289_v44, %v271_v46 }
 0x158   : > { %299 = vst.msk [vmem:[%s512_s26] sm:$0xff] %vm226_vm6, %v296_v45 }
 0x159   : > { %v295_v49 = vsel %vm518_vm9, %v291_v48, 0.0 }
 0x15a   : > { %v297_v50 = vadd.f32 %v295_v49, %v293_v47 }
 0x15c   : > { %300 = vst.msk [vmem:[%s512_s26 + $0x8] sm:$0xff] %vm226_vm6, %v297_v50 }
 0x15d PF: > { %s12_s11 = sadd.s32 1, %s449_s11   ;;  %s548_s9 = smov %s445_s10 }
 0x15e   : > { %p9_p7 = scmp.ge.s32.totalorder %s12_s11, 4   ;;  %s549_s10 = smov %s551_s12 }
 0x160   :  { %11 = sbr.rel (!%p9_p7) target bundleno = 2 (0x2), region = 65 }

</bundles_post_ra>
